<compile_context>
chip_gen: v7x
topology: tpu7x:2x2x1
jax: 0.10.0
libtpu: 0.0.40
codegen_flags: <defaults>
</compile_context>

<pallas_src>
import jax
import jax.numpy as jnp
from jax import lax
from jax.experimental import pallas as pl
from jax.experimental.pallas import tpu as pltpu


# ------------------------------- helpers ------------------------------------
def _round_up(x, m):
    return ((x + m - 1) // m) * m


def _tpu_vmem_capacity():
    try:
        info = pltpu.get_tpu_info()
        cap = getattr(info, "vmem_capacity_bytes", None)
        if cap:
            return int(cap)
    except Exception:
        pass
    return 64 << 20  # conservative fallback (v7x per-TensorCore VMEM)


def _vmem_tile_budget():
    # Keep the double-buffered per-step working set well under physical VMEM
    # (~24 MiB max on v7x's 64 MiB, proportionally more headroom on v5e/v6e).
    return min(_tpu_vmem_capacity() // 3, 24 << 20)


def _vmem_limit_bytes():
    cap = _tpu_vmem_capacity()
    # 48 MiB on v7x (64 MiB physical), 96 MiB on v5e/v6e (128 MiB physical) —
    # explicitly raised above the small default scoped limits.
    return int(min(cap * 3 // 4, 96 << 20))


def _cparams():
    return pltpu.CompilerParams(
        dimension_semantics=("parallel",),
        vmem_limit_bytes=_vmem_limit_bytes(),
    )


def _pick_edge_tile(E, per_lane_bytes, *, max_tile=8192):
    budget = _vmem_tile_budget()
    cap = max(128, (budget // max(per_lane_bytes, 1)) // 128 * 128)
    tile = min(max_tile, cap, _round_up(E, 128))
    if E >= 256:
        # keep >= 2 grid steps so the parallel axis can shard across v7x's 2 TCs
        tile = min(tile, _round_up(pl.cdiv(E, 2), 128))
    return int(max(tile, 128))


def _pick_node_tile(N, per_lane_bytes, *, max_tile=4096):
    if N <= 128:
        return int(N)  # block lane dim == full array dim: single exact block
    budget = _vmem_tile_budget()
    cap = max(128, (budget // max(per_lane_bytes, 1)) // 128 * 128)
    tile = min(max_tile, cap, (N // 128) * 128)   # never exceed the array lane dim
    if N >= 256:
        tile = min(tile, max(128, _round_up(pl.cdiv(N, 2), 128)))  # >= 2 steps (v7x)
    return int(max(tile, 128))


def _decode_scores(h1, h2, decoder):
    """h1, h2: (D, tile_e) f32, edges on lanes. Returns (1, tile_e) scores."""
    dot = jnp.sum(h1 * h2, axis=0, keepdims=True)
    if decoder == "dot":
        return dot
    ss1 = jnp.sum(h1 * h1, axis=0, keepdims=True)
    ss2 = jnp.sum(h2 * h2, axis=0, keepdims=True)
    eps = jnp.float32(1e-8)
    # torch.cosine_similarity: w12 * rsqrt(clamp_min(w1*w2, eps^2))  (EUP rsqrt)
    return dot * lax.rsqrt(jnp.maximum(ss1 * ss2, eps * eps))


# -------------------- fused kernel: MLP(endpoints) + decode ------------------
def make_fused_kernel(decoder, tile_e):
    def kernel(v1_ref, v2_ref, w_ref, b_ref, out_ref):
        w = w_ref[...]                                   # (D, D) effective weight
        b = b_ref[...]                                   # (D, 1) effective bias
        # One matmul over both endpoints: concat along lanes (128-aligned halves).
        cat = jnp.concatenate([v1_ref[...], v2_ref[...]], axis=1)   # (D, 2*tile_e)
        h = jnp.dot(w, cat, preferred_element_type=jnp.float32) + b
        h1 = h[:, :tile_e]
        h2 = h[:, tile_e:]
        out_ref[...] = _decode_scores(h1, h2, decoder).astype(out_ref.dtype)
    return kernel


def fused_edge_scores(v1t, v2t, w_eff, b_eff_col, decoder, tile_e):
    """v1t, v2t: [D, E_pad] raw endpoint features (edges on lanes). Returns [E_pad]."""
    D, E_pad = v1t.shape
    assert E_pad % tile_e == 0
    out = pl.pallas_call(
        make_fused_kernel(decoder, tile_e),
        out_shape=jax.ShapeDtypeStruct((1, E_pad), jnp.float32),
        grid_spec=pltpu.PrefetchScalarGridSpec(
            num_scalar_prefetch=0,
            grid=(E_pad // tile_e,),
            in_specs=[
                pl.BlockSpec((D, tile_e), lambda i: (0, i)),   # v1 (edges on lanes)
                pl.BlockSpec((D, tile_e), lambda i: (0, i)),   # v2
                pl.BlockSpec((D, D), lambda i: (0, 0)),        # W_eff = W2 @ W1
                pl.BlockSpec((D, 1), lambda i: (0, 0)),        # b_eff column
            ],
            out_specs=pl.BlockSpec((1, tile_e), lambda i: (0, i)),  # lane-dense scores
        ),
        compiler_params=_cparams(),
    )(v1t, v2t, w_eff, b_eff_col)
    return out[0]


# ----------------- full-node MLP path (used when 2E > 4N) --------------------
def node_mlp_t_kernel(xt_ref, w_ref, b_ref, out_ref):
    # h_t = W_eff @ x_t + b_eff  (single effective linear, transposed layout)
    out_ref[...] = (
        jnp.dot(w_ref[...], xt_ref[...], preferred_element_type=jnp.float32)
        + b_ref[...]
    ).astype(out_ref.dtype)


def node_mlp_t(xt, w_eff, b_eff_col):
    """xt: [D, N] transposed node features. Returns transformed [D, N]."""
    D, N = xt.shape
    tile_n = _pick_node_tile(N, 20 * D + 32)
    return pl.pallas_call(
        node_mlp_t_kernel,
        out_shape=jax.ShapeDtypeStruct((D, N), jnp.float32),
        grid_spec=pltpu.PrefetchScalarGridSpec(
            num_scalar_prefetch=0,
            grid=(pl.cdiv(N, tile_n),),            # ragged last block, no jnp.pad of x
            in_specs=[
                pl.BlockSpec((D, tile_n), lambda i: (0, i)),   # x^T tile (nodes on lanes)
                pl.BlockSpec((D, D), lambda i: (0, 0)),        # W_eff
                pl.BlockSpec((D, 1), lambda i: (0, 0)),        # b_eff column
            ],
            out_specs=pl.BlockSpec((D, tile_n), lambda i: (0, i)),
        ),
        compiler_params=_cparams(),
    )(xt, w_eff, b_eff_col)


def make_decode_kernel(decoder):
    def kernel(h1_ref, h2_ref, out_ref):
        out_ref[...] = _decode_scores(
            h1_ref[...].astype(jnp.float32), h2_ref[...].astype(jnp.float32), decoder
        ).astype(out_ref.dtype)
    return kernel


def decode_edge_scores(h1t, h2t, decoder, tile_e):
    """h1t, h2t: [D, E_pad] transformed endpoint features (edges on lanes)."""
    D, E_pad = h1t.shape
    assert E_pad % tile_e == 0
    out = pl.pallas_call(
        make_decode_kernel(decoder),
        out_shape=jax.ShapeDtypeStruct((1, E_pad), jnp.float32),
        grid_spec=pltpu.PrefetchScalarGridSpec(
            num_scalar_prefetch=0,
            grid=(E_pad // tile_e,),
            in_specs=[
                pl.BlockSpec((D, tile_e), lambda i: (0, i)),
                pl.BlockSpec((D, tile_e), lambda i: (0, i)),
            ],
            out_specs=pl.BlockSpec((1, tile_e), lambda i: (0, i)),  # lane-dense
        ),
        compiler_params=_cparams(),
    )(h1t, h2t)
    return out[0]


# ------------------------------ module forward -------------------------------
def inductive_edge_forward(params, x, edge_label_index, edge_decoder="dot"):
    if edge_decoder not in ("dot", "cosine_similarity"):
        raise ValueError(f"Unknown edge decoder: {edge_decoder}")
    N, D = x.shape
    E = edge_label_index.shape[1]

    # Activation-free 2-layer MLP collapses to one effective linear (exact math):
    #   h = x @ (W2 @ W1)^T + (W2 @ b1 + b2)
    w_eff = params["W2"] @ params["W1"]                          # (D, D)
    b_eff_col = (params["W2"] @ params["b1"] + params["b2"])[:, None]  # (D, 1)

    xt = x.astype(jnp.float32).T                                 # ONE transpose: [D, N]

    # Fused path wins until the extra per-edge matmul work dominates (cheap for small D).
    fused = 2 * E <= 4 * N
    per_lane = (32 * D + 32) if fused else (20 * D + 32)
    tile_e = _pick_edge_tile(E, per_lane)

    # Pad only the cheap int32 index (with node 0) so every edge block is full
    # and lane-dense; padded lanes are finite and sliced off at the end.
    E_pad = _round_up(E, tile_e)
    idx = edge_label_index.astype(jnp.int32)
    if E_pad != E:
        idx = jnp.pad(idx, ((0, 0), (0, E_pad - E)))

    if fused:
        v1t = jnp.take(xt, idx[0], axis=1)                       # [D, E_pad]
        v2t = jnp.take(xt, idx[1], axis=1)                       # [D, E_pad]
        scores = fused_edge_scores(v1t, v2t, w_eff, b_eff_col, edge_decoder, tile_e)
    else:
        ht = node_mlp_t(xt, w_eff, b_eff_col)                    # [D, N]
        h1t = jnp.take(ht, idx[0], axis=1)                       # [D, E_pad]
        h2t = jnp.take(ht, idx[1], axis=1)                       # [D, E_pad]
        scores = decode_edge_scores(h1t, h2t, edge_decoder, tile_e)

    return scores[:E]


# --------------------------------- reference ---------------------------------
def reference_forward(params, x, edge_label_index, edge_decoder="dot"):
    # Original two-matmul formulation (validates the W_eff collapse too).
    h = x @ params["W1"].T + params["b1"]
    h = h @ params["W2"].T + params["b2"]
    pred = jnp.take(h, edge_label_index, axis=0)
    v1, v2 = pred[0], pred[1]
    dot = jnp.sum(v1 * v2, axis=-1)
    if edge_decoder == "dot":
        return dot
    ss1 = jnp.sum(v1 * v1, axis=-1)
    ss2 = jnp.sum(v2 * v2, axis=-1)
    eps = 1e-8
    return dot * lax.rsqrt(jnp.maximum(ss1 * ss2, eps * eps))


if __name__ == "__main__":
    key = jax.random.PRNGKey(0)
    D = 32
    k_w1, k_b1, k_w2, k_b2, k_rest = jax.random.split(key, 5)

    # torch.nn.Linear-style params ([out, in] weights) and init ranges
    bound = 1.0 / (D ** 0.5)
    params = {
        "W1": jax.random.uniform(k_w1, (D, D), jnp.float32, -bound, bound),
        "b1": jax.random.uniform(k_b1, (D,), jnp.float32, -bound, bound),
        "W2": jax.random.uniform(k_w2, (D, D), jnp.float32, -bound, bound),
        "b2": jax.random.uniform(k_b2, (D,), jnp.float32, -bound, bound),
    }

    ok = True
    # Configs exercise: fused single-tile, node-path small-N (exact block),
    # fused multi-tile (E >= 256 -> 2 grid steps), node-path ragged N + 2-step decode.
    for (N, E) in ((64, 16), (96, 300), (500, 200), (300, 700)):
        k_x, k_idx, k_rest = jax.random.split(k_rest, 3)
        x = jax.random.normal(k_x, (N, D), jnp.float32)
        edge_label_index = jax.random.randint(k_idx, (2, E), 0, N, dtype=jnp.int32)
        for dec in ("dot", "cosine_similarity"):
            score = inductive_edge_forward(params, x, edge_label_index, dec)
            score = jax.block_until_ready(score)
            ref = reference_forward(params, x, edge_label_index, dec)
            if score.shape != (E,) or not bool(jnp.allclose(score, ref, atol=1e-4, rtol=1e-4)):
                ok = False

    if ok:
        print("KERNEL_OK")
</pallas_src>

<mosaic_0001>
module attributes {stable_mosaic.version = 11 : i64} {
  func.func @kernel(%arg0: i32, %arg1: memref<32x128xf32, #tpu.memory_space<vmem>>, %arg2: memref<32x128xf32, #tpu.memory_space<vmem>>, %arg3: memref<32x32xf32, #tpu.memory_space<vmem>>, %arg4: memref<32x1xf32, #tpu.memory_space<vmem>>, %arg5: memref<1x128xf32, #tpu.memory_space<vmem>>) attributes {dimension_semantics = [#tpu.dimension_semantics<parallel>], iteration_bounds = array<i64: 1>, scalar_prefetch = 0 : i64, scratch_operands = 0 : i64, tpu.core_type = #tpu.core_type<tc>, window_params = [{transform_indices = @transform_0, window_bounds = array<i64: 32, 128>}, {transform_indices = @transform_1, window_bounds = array<i64: 32, 128>}, {pipeline_mode = #tpu.pipeline_mode<synchronous>, transform_indices = @transform_2, window_bounds = array<i64: 32, 32>}, {pipeline_mode = #tpu.pipeline_mode<synchronous>, transform_indices = @transform_3, window_bounds = array<i64: 32, 1>}, {transform_indices = @transform_4, window_bounds = array<i64: 1, 128>}]} {
    %c0 = arith.constant 0 : index
    %c0_0 = arith.constant 0 : index
    %0 = vector.load %arg3[%c0, %c0_0] : memref<32x32xf32, #tpu.memory_space<vmem>>, vector<32x32xf32>
    %c0_1 = arith.constant 0 : index
    %c0_2 = arith.constant 0 : index
    %1 = vector.load %arg4[%c0_1, %c0_2] : memref<32x1xf32, #tpu.memory_space<vmem>>, vector<32x1xf32>
    %c0_3 = arith.constant 0 : index
    %c0_4 = arith.constant 0 : index
    %2 = vector.load %arg1[%c0_3, %c0_4] : memref<32x128xf32, #tpu.memory_space<vmem>>, vector<32x128xf32>
    %c0_5 = arith.constant 0 : index
    %c0_6 = arith.constant 0 : index
    %3 = vector.load %arg2[%c0_5, %c0_6] : memref<32x128xf32, #tpu.memory_space<vmem>>, vector<32x128xf32>
    %4 = tpu.concatenate %2, %3 in 1 : vector<32x128xf32>, vector<32x128xf32> -> vector<32x256xf32>
    %cst = arith.constant dense<0.000000e+00> : vector<32x256xf32>
    %5 = tpu.matmul %0, %4, %cst {dimension_numbers = #tpu.dot_dimension_numbers<[1], [0], [0], [1], [0, 0, 1, 1], [], []>} : vector<32x32xf32>, vector<32x256xf32>, vector<32x256xf32> -> vector<32x256xf32>
    %6 = vector.broadcast %1 : vector<32x1xf32> to vector<32x256xf32>
    %7 = arith.addf %5, %6 : vector<32x256xf32>
    %8 = vector.extract_strided_slice %7 {offsets = [0, 0], sizes = [32, 128], strides = [1, 1]} : vector<32x256xf32> to vector<32x128xf32>
    %9 = vector.extract_strided_slice %7 {offsets = [0, 128], sizes = [32, 128], strides = [1, 1]} : vector<32x256xf32> to vector<32x128xf32>
    %10 = arith.mulf %8, %9 : vector<32x128xf32>
    %cst_7 = arith.constant dense<0.000000e+00> : vector<128xf32>
    %11 = vector.multi_reduction <add>, %10, %cst_7 [0] : vector<32x128xf32> to vector<128xf32>
    %12 = vector.shape_cast %11 : vector<128xf32> to vector<1x128xf32>
    %c0_8 = arith.constant 0 : index
    %c0_9 = arith.constant 0 : index
    %13 = vector.load %arg5[%c0_8, %c0_9] : memref<1x128xf32, #tpu.memory_space<vmem>>, vector<1x128xf32>
    tpu.vector_store %arg5[%c0_8, %c0_9], %12 {strides = array<i32>} : memref<1x128xf32, #tpu.memory_space<vmem>>, vector<1x128xf32>,
    return
  }
  func.func @transform_0(%arg0: i32) -> (i32, i32) {
    %c0_i32 = arith.constant 0 : i32
    %c0_i32_0 = arith.constant 0 : i32
    return %c0_i32, %arg0 : i32, i32
  }
  func.func @transform_1(%arg0: i32) -> (i32, i32) {
    %c0_i32 = arith.constant 0 : i32
    %c0_i32_0 = arith.constant 0 : i32
    return %c0_i32, %arg0 : i32, i32
  }
  func.func @transform_2(%arg0: i32) -> (i32, i32) {
    %c0_i32 = arith.constant 0 : i32
    %c0_i32_0 = arith.constant 0 : i32
    %c0_i32_1 = arith.constant 0 : i32
    return %c0_i32, %c0_i32_0 : i32, i32
  }
  func.func @transform_3(%arg0: i32) -> (i32, i32) {
    %c0_i32 = arith.constant 0 : i32
    %c0_i32_0 = arith.constant 0 : i32
    %c0_i32_1 = arith.constant 0 : i32
    return %c0_i32, %c0_i32_0 : i32, i32
  }
  func.func @transform_4(%arg0: i32) -> (i32, i32) {
    %c0_i32 = arith.constant 0 : i32
    %c0_i32_0 = arith.constant 0 : i32
    return %c0_i32, %arg0 : i32, i32
  }
}

</mosaic_0001>

<bundles_post_ra>
// kernel: tpu_custom_call.1
= control target key start
LH: loop header
LB: loop body
LE: loop exit
PB: predicated region body
PF: predicated region fallthrough
CT: control target
= control target key end

     0   :  { %9 = vsyncpa [#allocation3], 0  ;;  %s403_s0 = inlined_call_operand.vmem [shape: f32[32,128], index: 0, kind: input, shape index: {}]   ;;  %s404_s1 = inlined_call_operand.hbm [shape: f32[32,128], index: 1, kind: input, shape index: {}]   ;;  %s405_s2 = inlined_call_operand.hbm [shape: f32[32,32], index: 2, kind: input, shape index: {}]   ;;  %s406_s3 = inlined_call_operand.vmem [shape: f32[32,1], index: 3, kind: input, shape index: {}]   ;;  %s407_s4 = inlined_call_operand.hbm [shape: f32[1,128], index: 4, kind: output, shape index: {}]  }
   0x1   :  { %10 = vsyncpa [#allocation6], 0 }
   0x2   :  { %11 = vsyncpa [#allocation4], 0  ;;  %s311_s15 = smov [#allocation2]   ;;  %s239_s19 = scalar_lea.hbm %s404_s1, 512 }
   0x3   :  { %s19_s16 = sshll.u32 %s311_s15, 4  ;;  %p240_p0 = scmp.ne.s32.totalorder %s404_s1, %s239_s19  ;;  %s20_s16 = int_to_ptr.vmem [resolvable:$true] %s19_s16 }
   0x4   :  { %p243_p1 = scmp.lt.u32.totalorder %s239_s19, %s404_s1 }
   0x6   :  { %p245_p2 = pnand %p243_p1, %p240_p0 }
   0x8   :  { %248 = shalt.err (!%p245_p2)
}
   0x9   :  { %s249_s24 = scalar_lea.vmem %s20_s16, 512  ;;  %p254_p4 = scmp.lt.s32.totalorder %s20_s16, %s20_s16 }
   0xa   :  { %p250_p3 = scmp.ne.s32.totalorder %s20_s16, %s249_s24  ;;  %p255_p5 = scmp.lt.s32.totalorder %s249_s24, %s249_s24 }
   0xc   :  { %p256_p6 = por %p255_p5, %p254_p4 }
   0xe   :  { %p257_p7 = pnand %p256_p6, %p250_p3 }
  0x10   :  { %260 = shalt.err (!%p257_p7)
}
  0x11   :  { %s312_s25 = smov 128   ;;  %s313_s26 = smov 8  }
  0x12   :  { %25 = dma.hbm_to_vmem [thread:$0]  %s404_s1, 512, %s20_s16, [#allocation3], %s312_s25, %s312_s25, %s313_s26  }
  0x13   :  { %s314_s29 = smov [#allocation5]   ;;  %s261_s7 = scalar_lea.hbm %s405_s2, 512 }
  0x14   :  { %s31_s30 = sshll.u32 %s314_s29, 4  ;;  %p262_p8 = scmp.ne.s32.totalorder %s405_s2, %s261_s7  ;;  %s32_s30 = int_to_ptr.vmem [resolvable:$true] %s31_s30 }
  0x15   :  { %p265_p9 = scmp.lt.u32.totalorder %s261_s7, %s405_s2 }
  0x17   :  { %p267_p10 = pnand %p265_p9, %p262_p8 }
  0x19   :  { %270 = shalt.err (!%p267_p10)
}
  0x1a   :  { %s271_s12 = scalar_lea.vmem %s32_s30, 512  ;;  %p276_p12 = scmp.lt.s32.totalorder %s32_s30, %s32_s30 }
  0x1b   :  { %p272_p11 = scmp.ne.s32.totalorder %s32_s30, %s271_s12  ;;  %p277_p13 = scmp.lt.s32.totalorder %s271_s12, %s271_s12 }
  0x1d   :  { %p278_p0 = por %p277_p13, %p276_p12 }
  0x1f   :  { %p279_p1 = pnand %p278_p0, %p272_p11 }
  0x21   :  { %282 = shalt.err (!%p279_p1)
}
  0x22   :  { %37 = dma.hbm_to_vmem [thread:$0]  %s405_s2, 512, %s32_s30, [#allocation6], %s312_s25, %s312_s25, %s313_s26  }
  0x23   :  { %305 = dma.done.wait [#allocation3], 512  }
  0x24   :  { %306 = vsyncadd [#allocation3], 4294966784 }
  0x25   :  { %307 = dma.done.wait [#allocation6], 512  }
  0x26   :  { %308 = vsyncadd [#allocation6], 4294966784  ;;  %v315_v0 = vmov 0.0   ;;  %v316_v1 = vmov 0   ;;  %v58_v2 = vld [vmem:[#allocation2] sm:$0xff]  ;;  %v59_v3 = vld [vmem:[#allocation2 + $0x8] sm:$0xff] }
  0x27   :  { %159 = vmatprep.mubr.f32.mxu0 %v315_v0  ;;  %171 = vmatprep.mubr.f32.mxu1 %v315_v0  ;;  %v54_v4 = vld [vmem:[%s403_s0] sm:$0xff]  ;;  %v218_v5 = vpack.c.bf16 %v59_v3, %v58_v2  ;;  %v55_v6 = vld [vmem:[%s403_s0 + $0x8] sm:$0xff]  ;;  %v60_v7 = vld [vmem:[#allocation2 + $0x10] sm:$0xff]  ;;  %vm82_vm0 = vcmask 261120  }
  0x28   :  { %237 = vset.pattern.permute.xlu0 %v316_v1  ;;  %238 = vset.pattern.permute.xlu1 %v316_v1  ;;  %v61_v8 = vld [vmem:[#allocation2 + $0x18] sm:$0xff]  ;;  %v220_v9 = vpack.c.bf16 %v55_v6, %v54_v4  ;;  %v56_v11 = vld [vmem:[%s403_s0 + $0x10] sm:$0xff]  ;;  %v50_v14 = vld [vmem:[%s406_s3] sm:$0xff] }
  0x29   :  { %v222_v10 = vpack.c.bf16 %v61_v8, %v60_v7  ;;  %v57_v12 = vld [vmem:[%s403_s0 + $0x18] sm:$0xff]  ;;  %219 = vmatprep.subr.bf16.mxu0 %v218_v5  ;;  %226 = vmatprep.subr.bf16.mxu1 %v218_v5  ;;  %v52_v15 = vld [vmem:[%s406_s3 + $0x10] sm:$0xff]  ;;  %v51_v16 = vld [vmem:[%s406_s3 + $0x8] sm:$0xff] }
  0x2a   :  { %221 = vmatpush1.bf16.msra.mxu0 %v220_v9  ;;  %228 = vmatpush1.bf16.msra.mxu1 %v220_v9  ;;  %v224_v13 = vpack.c.bf16 %v57_v12, %v56_v11  ;;  %v53_v17 = vld [vmem:[%s406_s3 + $0x18] sm:$0xff]  ;;  %v46_v18 = vld [vmem:[#allocation5] sm:$0xff]  ;;  %v48_v19 = vld [vmem:[#allocation5 + $0x10] sm:$0xff]  ;;  %s317_s3 = smov [#allocation7]  }
  0x2b   :  { %223 = vmatprep.subr.bf16.mxu0 %v222_v10  ;;  %227 = vmatprep.subr.bf16.mxu1 %v222_v10  ;;  %v47_v20 = vld [vmem:[#allocation5 + $0x8] sm:$0xff]  ;;  %v49_v21 = vld [vmem:[#allocation5 + $0x18] sm:$0xff]  ;;  %s204_s28 = sshll.u32 %s317_s3, 4  ;;  %s205_s28 = int_to_ptr.vmem [resolvable:$true] %s204_s28 }
  0x2c   :  { %64 = vperm.xlu0 %237, %v50_v14   ;;  %74 = vperm.xlu1 %238, %v52_v15   ;;  %s283_s29 = scalar_lea.vmem %s205_s28, 16  ;;  %s287_s30 = scalar_lea.vmem %s205_s28, 32 }
  0x2d   :  { %p284_p2 = scmp.ne.s32.totalorder %s205_s28, %s283_s29  ;;  %p288_p3 = scmp.lt.s32.totalorder %s205_s28, %s205_s28 }
  0x2e   :  { %225 = vmatpush1.bf16.msra.mxu0 %v224_v13  ;;  %229 = vmatpush1.bf16.msra.mxu1 %v224_v13  ;;  %p289_p4 = scmp.lt.s32.totalorder %s287_s30, %s283_s29 }
  0x30   :  { %69 = vperm.xlu0 %237, %v51_v16   ;;  %79 = vperm.xlu1 %238, %v53_v17   ;;  %p290_p5 = por %p289_p4, %p288_p3 }
  0x31   :  { %214 = vmatmul.mubr.msk.f32.vlgmr.msra.gmra.mrb[0].mxu0 %vm82_vm0, %v46_v18  ;;  %216 = vmatmul.mubr.msk.f32.vlgmr.msra.gmra.mrb[0].mxu1 %vm82_vm0, %v48_v19 }
  0x32   :  { %165 = vmatprep.mubr.f32.mxu0 %v315_v0  ;;  %177 = vmatprep.mubr.f32.mxu1 %v315_v0  ;;  %p291_p6 = pnand %p290_p5, %p284_p2 }
  0x35   :  { %215 = vmatmul.mubr.msk.f32.gmra.mrb[2].mxu0 %vm82_vm0, %v47_v20  ;;  %217 = vmatmul.mubr.msk.f32.gmra.mrb[2].mxu1 %vm82_vm0, %v49_v21 }
  0xab   :  { %v75_v22 = vpop.permute.xlu1 %74  ;;  %v65_v23 = vpop.permute.xlu0 %64 }
  0xaf   :  { %v80_v32 = vpop.permute.xlu1 %79  ;;  %v70_v33 = vpop.permute.xlu0 %69 }
 0x104   :  { %v161_v24 = vpop.f32.mrb[0].mxu0  ;;  %v173_v25 = vpop.f32.mrb[0].mxu1 }
 0x105   :  { %v162_v26 = vadd.f32 %v161_v24, %v65_v23  ;;  %v163_v27 = vpop.f32.mrb[1].mxu0  ;;  %v174_v28 = vadd.f32 %v173_v25, %v75_v22  ;;  %v175_v29 = vpop.f32.mrb[1].mxu1 }
 0x106   :  { %v164_v30 = vadd.f32 %v163_v27, %v65_v23  ;;  %v176_v31 = vadd.f32 %v175_v29, %v75_v22 }
 0x108   :  { %v184_v34 = vmul.f32 %v164_v30, %v162_v26  ;;  %v186_v35 = vmul.f32 %v176_v31, %v174_v28  ;;  %v167_v36 = vpop.f32.mrb[2].mxu0  ;;  %v179_v37 = vpop.f32.mrb[2].mxu1 }
 0x109   :  { %v168_v38 = vadd.f32 %v167_v36, %v70_v33  ;;  %v180_v39 = vadd.f32 %v179_v37, %v80_v32  ;;  %v169_v40 = vpop.f32.mrb[3].mxu0  ;;  %v181_v41 = vpop.f32.mrb[3].mxu1 }
 0x10a   :  { %v170_v42 = vadd.f32 %v169_v40, %v70_v33  ;;  %v182_v43 = vadd.f32 %v181_v41, %v80_v32 }
 0x10c   :  { %v185_v44 = vmul.f32 %v170_v42, %v168_v38  ;;  %v187_v45 = vmul.f32 %v182_v43, %v180_v39 }
 0x10e   :  { %v188_v46 = vadd.f32 %v185_v44, %v184_v34 }
 0x110   :  { %v189_v47 = vadd.f32 %v188_v46, %v186_v35 }
 0x112   :  { %v190_v48 = vadd.f32 %v189_v47, %v187_v45 }
 0x114   :  { %v191_v49 = vrot.slane %v190_v48, 4 }
 0x116   :  { %v192_v50 = vadd.f32 %v191_v49, %v190_v48 }
 0x118   :  { %v193_v51 = vrot.slane %v192_v50, 2 }
 0x11a   :  { %v194_v52 = vadd.f32 %v193_v51, %v192_v50 }
 0x11c   :  { %v195_v53 = vrot.slane %v194_v52, 1 }
 0x11e   :  { %v196_v54 = vadd.f32 %v195_v53, %v194_v52 }
 0x120   :  { %197 = vst [vmem:[#allocation7] sm:$0x1] %v196_v54 }
 0x121   :  { %294 = shalt.err (!%p291_p6)
}
 0x122   :  { %s295_s7 = scalar_lea.hbm %s407_s4, 16 }
 0x123   :  { %p296_p7 = scmp.ne.s32.totalorder %s407_s4, %s295_s7  ;;  %p299_p8 = scmp.lt.u32.totalorder %s295_s7, %s407_s4 }
 0x125   :  { %p301_p9 = pnand %p299_p8, %p296_p7 }
 0x127   :  { %304 = shalt.err (!%p301_p9)
}
 0x128   :  { %207 = dma.vmem_to_hbm [thread:$0]  %s205_s28, 16, %s407_s4, [#allocation4]  }
 0x129   :  { %309 = dma.done.wait [#allocation4], 16  }
 0x12a   :  { %310 = vsyncadd [#allocation4], 4294967280 }
 0x12b   :  { %211 = vsyncpa [#allocation3], 1 }
 0x12c   :  { %212 = vsyncpa [#allocation6], 1 }
 0x12d   :  { %213 = vsyncpa [#allocation4], 1 }

</bundles_post_ra>
